<compile_context>
chip_gen: v7x
topology: tpu7x:2x2x1
jax: 0.10.0
libtpu: 0.0.40
codegen_flags: <defaults>
</compile_context>

<pallas_src>
import jax
import jax.numpy as jnp
from jax import lax
from jax.experimental import pallas as pl
from jax.experimental.pallas import tpu as pltpu

LATENT_DIM = 32   # module default
_CH = 8           # batch rows per in-kernel chunk (multiple of 8 sublanes)


def _round_up(v: int, m: int) -> int:
    return ((v + m - 1) // m) * m


def _make_kernel(D: int, TB: int, CH: int):
    """Kernel over one batch tile: x3 (TB, 1+D, D) -> loc (TB, D), cov (TB, D, D)."""
    n_chunks = TB // CH

    def kernel(x_ref, loc_ref, cov_ref):
        # loc = row 0 of each (1+D, D) slab; one strided load/store per grid step.
        loc_ref[...] = x_ref[:, 0, :]

        # Upper-triangular mask built once per grid step, directly at (CH, D, D)
        # (JAX does not CSE broadcast_in_dim, so keep it out of the loop).
        rows = lax.broadcasted_iota(jnp.int32, (CH, D, D), 1)
        cols = lax.broadcasted_iota(jnp.int32, (CH, D, D), 2)
        mask = cols >= rows                       # torch.triu
        zeros = jnp.zeros((CH, D, D), dtype=x_ref.dtype)

        def body(c, carry):
            i = pl.multiple_of(c * CH, CH)
            # L' = rows 1..D of each slab -> (CH, D, D); sublane-offset load.
            Lp = x_ref[pl.ds(i, CH), 1:, :]
            Lu = jnp.where(mask, Lp, zeros)
            # Batched L @ L^T: bij,bkj->bik (no explicit transpose / XLU work).
            # precision=HIGHEST -> faithful f32 matmul semantics (torch ref).
            cov = lax.dot_general(
                Lu,
                Lu,
                dimension_numbers=(((2,), (2,)), ((0,), (0,))),
                preferred_element_type=jnp.float32,
                precision=lax.Precision.HIGHEST,
            )
            # +1e-8 added to EVERY entry, matching the PyTorch module.
            cov_ref[pl.ds(i, CH), :, :] = (cov + 1e-8).astype(cov_ref.dtype)
            return carry

        # Partial unroll: lets the LLO scheduler overlap chunk c+1's load/mask
        # with chunk c's matmuls and stores.
        lax.fori_loop(0, n_chunks, body, 0, unroll=min(4, n_chunks))

    return kernel


def full_covariance_gaussian(x: jax.Array, latent_dim: int = LATENT_DIM,
                             batch_tile: int = 256):
    """Pallas implementation of FullCovarianceGaussian.forward.

    Returns (loc, cov) — the parameters of the MultivariateNormal posterior.
    """
    D = latent_dim
    mult = 1 + D
    assert x.shape[-1] % mult == 0
    assert x.shape[-1] == D * mult, "last dim must be latent_dim * (1 + latent_dim)"
    B = x.shape[0]

    # Row-major reshape is free (no strided HBM copy): (B, 1+D, D).
    x3 = x.reshape(B, mult, D)

    # Batch tile: aim for >= ~4 grid steps (pipelining + even megacore split),
    # capped at `batch_tile`; always a multiple of _CH (>= 8, which also
    # satisfies the sublane constraint of the (TB, D) loc output block).
    target_steps = max(4, -(-B // batch_tile))
    TB = max(_CH, _round_up(-(-B // target_steps), _CH))
    TB = min(TB, _round_up(batch_tile, _CH))
    grid = (pl.cdiv(B, TB),)   # ragged tail handled by Pallas boundary masking

    # VMEM budget: blocks are lane-padded to 128 lanes (D=32 -> ~4x inflation);
    # in + loc + cov, double-buffered.  Raise the scoped-VMEM limit when
    # needed (v5e default is only 16 MiB; v6e/v7x default is 32 MiB).
    padded_row_bytes = 4 * (_round_up(mult, 8) * 128 + D * 128 + 128)
    vmem_limit = max(32 * 1024 * 1024, (2 * TB * padded_row_bytes * 5) // 4)

    kernel = _make_kernel(D, TB, _CH)

    loc, cov = pl.pallas_call(
        kernel,
        out_shape=(
            jax.ShapeDtypeStruct((B, D), x.dtype),
            jax.ShapeDtypeStruct((B, D, D), x.dtype),
        ),
        grid=grid,
        in_specs=[pl.BlockSpec((TB, mult, D), lambda b: (b, 0, 0))],
        out_specs=(
            pl.BlockSpec((TB, D), lambda b: (b, 0)),
            pl.BlockSpec((TB, D, D), lambda b: (b, 0, 0)),
        ),
        compiler_params=pltpu.CompilerParams(
            dimension_semantics=("parallel",),
            vmem_limit_bytes=int(vmem_limit),
        ),
    )(x3)
    return loc, cov


def _reference(x: jax.Array, latent_dim: int = LATENT_DIM):
    """Pure-JAX reference mirroring the PyTorch forward."""
    D = latent_dim
    B = x.shape[0]
    loc = x[:, :D]
    L = jnp.triu(x[:, D:].reshape(B, D, D))
    cov = jnp.einsum("bij,bkj->bik", L, L,
                     precision=lax.Precision.HIGHEST) + 1e-8
    return loc, cov


if __name__ == "__main__":
    D = LATENT_DIM

    # Small case matching the module defaults: batch=2, latent_dim=32.
    B = 2
    x = jax.random.normal(jax.random.PRNGKey(0), (B, D * (1 + D)),
                          dtype=jnp.float32)
    loc, cov = full_covariance_gaussian(x, D)
    jax.block_until_ready((loc, cov))

    loc_ref, cov_ref = _reference(x, D)
    assert loc.shape == (B, D) and cov.shape == (B, D, D)
    assert jnp.allclose(loc, loc_ref, atol=1e-6, rtol=1e-6)
    assert jnp.allclose(cov, cov_ref, atol=1e-4, rtol=1e-4)

    # Ragged batch exercises the multi-step grid + boundary-masked tail block
    # (no wrapper pad/slice any more).
    B2 = 70
    x2 = jax.random.normal(jax.random.PRNGKey(1), (B2, D * (1 + D)),
                           dtype=jnp.float32)
    loc2, cov2 = full_covariance_gaussian(x2, D)
    jax.block_until_ready((loc2, cov2))

    loc2_ref, cov2_ref = _reference(x2, D)
    assert loc2.shape == (B2, D) and cov2.shape == (B2, D, D)
    assert jnp.allclose(loc2, loc2_ref, atol=1e-6, rtol=1e-6)
    assert jnp.allclose(cov2, cov2_ref, atol=1e-4, rtol=1e-4)

    print("KERNEL_OK")
</pallas_src>

<mosaic_0001>
module attributes {stable_mosaic.version = 11 : i64} {
  func.func @kernel(%arg0: i32, %arg1: memref<8x33x32xf32, #tpu.memory_space<vmem>>, %arg2: memref<8x32xf32, #tpu.memory_space<vmem>>, %arg3: memref<8x32x32xf32, #tpu.memory_space<vmem>>) attributes {dimension_semantics = [#tpu.dimension_semantics<parallel>], iteration_bounds = array<i64: 1>, scalar_prefetch = 0 : i64, scratch_operands = 0 : i64, tpu.core_type = #tpu.core_type<tc>, window_params = [{transform_indices = @transform_0, window_bounds = array<i64: 8, 33, 32>}, {transform_indices = @transform_1, window_bounds = array<i64: 8, 32>}, {transform_indices = @transform_2, window_bounds = array<i64: 8, 32, 32>}]} {
    %c0 = arith.constant 0 : index
    %c0_0 = arith.constant 0 : index
    %c0_1 = arith.constant 0 : index
    %0 = vector.load %arg1[%c0, %c0_0, %c0_1] : memref<8x33x32xf32, #tpu.memory_space<vmem>>, vector<8x1x32xf32>
    %1 = vector.shape_cast %0 : vector<8x1x32xf32> to vector<8x32xf32>
    %c0_2 = arith.constant 0 : index
    %c0_3 = arith.constant 0 : index
    %2 = vector.load %arg2[%c0_2, %c0_3] : memref<8x32xf32, #tpu.memory_space<vmem>>, vector<8x32xf32>
    tpu.vector_store %arg2[%c0_2, %c0_3], %1 {strides = array<i32>} : memref<8x32xf32, #tpu.memory_space<vmem>>, vector<8x32xf32>,
    %3 = tpu.iota {dimensions = array<i32: 1>} : vector<8x32x32xi32>
    %4 = tpu.iota {dimensions = array<i32: 2>} : vector<8x32x32xi32>
    %5 = arith.cmpi sge, %4, %3 : vector<8x32x32xi32>
    %cst = arith.constant 0.000000e+00 : f32
    %6 = vector.broadcast %cst : f32 to vector<8x32x32xf32>
    %c0_i32 = arith.constant 0 : i32
    %c8_i32 = arith.constant 8 : i32
    %7 = arith.muli %c0_i32, %c8_i32 : i32
    %8 = tpu.assume_multiple %7, 8 : i32
    %9 = arith.index_cast %8 : i32 to index
    %c1 = arith.constant 1 : index
    %c0_4 = arith.constant 0 : index
    %10 = vector.load %arg1[%9, %c1, %c0_4] : memref<8x33x32xf32, #tpu.memory_space<vmem>>, vector<8x32x32xf32>
    %11 = arith.select %5, %10, %6 : vector<8x32x32xi1>, vector<8x32x32xf32>
    %cst_5 = arith.constant dense<0.000000e+00> : vector<8x32x32xf32>
    %12 = tpu.matmul %11, %11, %cst_5 {dimension_numbers = #tpu.dot_dimension_numbers<[2], [2], [1], [1], [0, 0, 0, 1, 1, 1], [0], [0]>, precision = #tpu.contract_precision<fp32>} : vector<8x32x32xf32>, vector<8x32x32xf32>, vector<8x32x32xf32> -> vector<8x32x32xf32>
    %cst_6 = arith.constant 9.99999993E-9 : f32
    %13 = vector.broadcast %cst_6 : f32 to vector<8x32x32xf32>
    %14 = arith.addf %12, %13 : vector<8x32x32xf32>
    %15 = arith.index_cast %8 : i32 to index
    %c0_7 = arith.constant 0 : index
    %c0_8 = arith.constant 0 : index
    %16 = vector.load %arg3[%15, %c0_7, %c0_8] : memref<8x32x32xf32, #tpu.memory_space<vmem>>, vector<8x32x32xf32>
    tpu.vector_store %arg3[%15, %c0_7, %c0_8], %14 {strides = array<i32>} : memref<8x32x32xf32, #tpu.memory_space<vmem>>, vector<8x32x32xf32>,
    %c1_i32 = arith.constant 1 : i32
    return
  }
  func.func @transform_0(%arg0: i32) -> (i32, i32, i32) {
    %c0_i32 = arith.constant 0 : i32
    %c0_i32_0 = arith.constant 0 : i32
    %c0_i32_1 = arith.constant 0 : i32
    return %arg0, %c0_i32, %c0_i32_0 : i32, i32, i32
  }
  func.func @transform_1(%arg0: i32) -> (i32, i32) {
    %c0_i32 = arith.constant 0 : i32
    %c0_i32_0 = arith.constant 0 : i32
    return %arg0, %c0_i32 : i32, i32
  }
  func.func @transform_2(%arg0: i32) -> (i32, i32, i32) {
    %c0_i32 = arith.constant 0 : i32
    %c0_i32_0 = arith.constant 0 : i32
    %c0_i32_1 = arith.constant 0 : i32
    return %arg0, %c0_i32, %c0_i32_0 : i32, i32, i32
  }
}

</mosaic_0001>

<bundles_post_ra>
// kernel: tpu_custom_call.1
= control target key start
LH: loop header
LB: loop body
LE: loop exit
PB: predicated region body
PF: predicated region fallthrough
CT: control target
= control target key end

     0   :  { %8 = vsyncpa [#allocation3], 0  ;;  %s7904_s0 = inlined_call_operand.vmem [shape: f32[2,33,32], index: 0, kind: input, shape index: {}]   ;;  %s7905_s1 = inlined_call_operand.hbm [shape: f32[2,32], index: 1, kind: output, shape index: {0}]   ;;  %s7906_s2 = inlined_call_operand.hbm [shape: f32[2,32,32], index: 2, kind: output, shape index: {1}]  }
   0x1   :  { %9 = vsyncpa [#allocation5], 0  ;;  %v13_v0 = vld [vmem:[%s7904_s0 + $0x28] sm:$0x1]  ;;  %v14_v1 = vld [vmem:[%s7904_s0 + $0x50] sm:$0x1]  ;;  %v52_v6 = vlaneseq }
   0x2   :  { %v15_v2 = vld [vmem:[%s7904_s0 + $0x78] sm:$0x1]  ;;  %v16_v3 = vld [vmem:[%s7904_s0 + $0xa0] sm:$0x1]  ;;  %v17_v5 = vld [vmem:[%s7904_s0 + $0xc8] sm:$0x1] }
   0x3   :  { %v12_v4 = vld [vmem:[%s7904_s0] sm:$0x1]  ;;  %v18_v7 = vld [vmem:[%s7904_s0 + $0xf0] sm:$0x1]  ;;  %v28_v8 = vrot.slane %v13_v0, 7  ;;  %vm29_vm0 = vcmask 1041409  }
   0x4   :  { %v31_v9 = vrot.slane %v14_v1, 6  ;;  %vm32_vm1 = vcmask 1042434   ;;  %v19_v10 = vld [vmem:[%s7904_s0 + $0x118] sm:$0x1]  ;;  %v34_v11 = vrot.slane %v15_v2, 5  ;;  %vm35_vm2 = vcmask 1043459  }
   0x5   :  { %v37_v12 = vrot.slane %v16_v3, 4  ;;  %v30_v13 = vsel %vm29_vm0, %v28_v8, %v12_v4  ;;  %vm38_vm3 = vcmask 1044484   ;;  %v40_v14 = vrot.slane %v17_v5, 3  ;;  %v65_v21 = vld [vmem:[%s7904_s0 + $0x1] sm:$0xff]  ;;  %v69_v22 = vld [vmem:[%s7904_s0 + $0x29] sm:$0xff]  ;;  %v70_v28 = vld [vmem:[%s7904_s0 + $0x31] sm:$0xff] }
   0x6   :  { %v33_v15 = vsel %vm32_vm1, %v31_v9, %v30_v13  ;;  %vm41_vm4 = vcmask 1045509   ;;  %v43_v16 = vrot.slane %v18_v7, 2  ;;  %vm44_vm5 = vcmask 1046534   ;;  %v66_v27 = vld [vmem:[%s7904_s0 + $0x9] sm:$0xff]  ;;  %v67_v38 = vld [vmem:[%s7904_s0 + $0x11] sm:$0xff]  ;;  %v68_v39 = vld [vmem:[%s7904_s0 + $0x19] sm:$0xff] }
   0x7   :  { %v36_v17 = vsel %vm35_vm2, %v34_v11, %v33_v15  ;;  %v46_v18 = vrot.slane %v19_v10, 1  ;;  %v53_v19 = vshrl.u32 %v52_v6, 7  ;;  %v58_v20 = vand.u32 127, %v52_v6  ;;  %v71_v44 = vld [vmem:[%s7904_s0 + $0x39] sm:$0xff]  ;;  %v72_v45 = vld [vmem:[%s7904_s0 + $0x41] sm:$0xff]  ;;  %v92_v35 = vld [vmem:[%s7904_s0 + $0x109] sm:$0xff] }
   0x8   :  { %v39_v23 = vsel %vm38_vm3, %v37_v12, %v36_v17  ;;  %vm47_vm6 = vcmask 1047559   ;;  %vm50_vm7 = vcmask 261120   ;;  %v91_v26 = vld [vmem:[%s7904_s0 + $0x101] sm:$0xff] }
   0x9   :  { %v42_v24 = vsel %vm41_vm4, %v40_v14, %v39_v23  ;;  %v54_v25 = vadd.s32 8, %v53_v19  ;;  %vm6940_vm8 = vcmp.ge.s32.totalorder %v58_v20, %v53_v19  ;;  %v55_v29 = vadd.s32 16, %v53_v19 }
   0xa   :  { %v45_v30 = vsel %vm44_vm5, %v43_v16, %v42_v24  ;;  %v97_v31 = vsel %vm6940_vm8, %v65_v21, 0.0  ;;  %v101_v32 = vsel %vm6940_vm8, %v69_v22, 0.0  ;;  %v56_v33 = vadd.s32 24, %v53_v19 }
   0xb   :  { %v48_v34 = vsel %vm47_vm6, %v46_v18, %v45_v30  ;;  %vm6955_vm9 = vcmp.ge.s32.totalorder %v58_v20, %v54_v25  ;;  %v130_v36 = vsel %vm50_vm7, %v97_v31, 0  ;;  %v756_v37 = vsel %vm50_vm7, %v101_v32, 0 }
   0xc   :  { %51 = vst.msk [vmem:[#allocation2] sm:$0xff] %vm50_vm7, %v48_v34  ;;  %v98_v40 = vsel %vm6955_vm9, %v66_v27, 0.0  ;;  %v6970_v41 = vand.u32 4294901760, %v130_v36  ;;  %v102_v42 = vsel %vm6955_vm9, %v70_v28, 0.0  ;;  %v6974_v43 = vand.u32 4294901760, %v756_v37 }
   0xd   :  { %v133_v46 = vsel %vm50_vm7, %v98_v40, 0  ;;  %v759_v47 = vsel %vm50_vm7, %v102_v42, 0  ;;  %vm6984_vm10 = vcmp.ge.s32.totalorder %v58_v20, %v55_v29  ;;  %vm6988_vm11 = vcmp.ge.s32.totalorder %v58_v20, %v56_v33 }
   0xe   :  { %v6992_v50 = vand.u32 4294901760, %v133_v46  ;;  %v6994_v51 = vand.u32 4294901760, %v759_v47  ;;  %v99_v52 = vsel %vm6984_vm10, %v67_v38, 0.0  ;;  %v100_v53 = vsel %vm6988_vm11, %v68_v39, 0.0 }
   0xf   :  { %v136_v54 = vsel %vm50_vm7, %v99_v52, 0  ;;  %v139_v55 = vsel %vm50_vm7, %v100_v53, 0  ;;  %v103_v56 = vsel %vm6984_vm10, %v71_v44, 0.0  ;;  %v104_v57 = vsel %vm6988_vm11, %v72_v45, 0.0 }
  0x10   :  { %v7008_v58 = vpack.c.bf16 %v6992_v50, %v6970_v41  ;;  %v7012_v59 = vpack.c.bf16 %v6994_v51, %v6974_v43  ;;  %v7014_v60 = vand.u32 4294901760, %v136_v54  ;;  %v7016_v61 = vand.u32 4294901760, %v139_v55 }
  0x11   :  { %v762_v62 = vsel %vm50_vm7, %v103_v56, 0  ;;  %v765_v63 = vsel %vm50_vm7, %v104_v57, 0  ;;  %v7021_v0 = vsub.f32 %v130_v36, %v6970_v41  ;;  %v7024_v1 = vsub.f32 %v133_v46, %v6992_v50  ;;  %v73_v56 = vld [vmem:[%s7904_s0 + $0x51] sm:$0xff]  ;;  %v74_v57 = vld [vmem:[%s7904_s0 + $0x59] sm:$0xff] }
  0x12   :  { %6260 = vmatprep.subr.bf16.mxu0 %v7008_v58  ;;  %6308 = vmatprep.subr.bf16.mxu1 %v7012_v59  ;;  %v7030_v2 = vpack.c.bf16 %v7016_v61, %v7014_v60  ;;  %v7032_v3 = vand.u32 4294901760, %v762_v62  ;;  %v7034_v4 = vand.u32 4294901760, %v765_v63  ;;  %v7037_v5 = vsub.f32 %v756_v37, %v6974_v43 }
  0x13   :  { %6262 = vmatpush3.bf16.xpose.msra.mxu0 %v7008_v58  ;;  %6310 = vmatpush3.bf16.xpose.msra.mxu1 %v7012_v59  ;;  %v7042_v6 = vand.u32 4294901760, %v7021_v0  ;;  %v7045_v7 = vand.u32 4294901760, %v7024_v1  ;;  %v7048_v8 = vsub.f32 %v759_v47, %v6994_v51  ;;  %v7051_v9 = vsub.f32 %v136_v54, %v7014_v60 }
  0x14   :  { %6264 = vmatprep.subr.bf16.mxu0 %v7030_v2  ;;  %v7056_v10 = vpack.c.bf16 %v7034_v4, %v7032_v3  ;;  %v7059_v11 = vand.u32 4294901760, %v7037_v5  ;;  %v7062_v12 = vsub.f32 %v139_v55, %v7016_v61  ;;  %v7065_v13 = vsub.f32 %v762_v62, %v7032_v3  ;;  %v77_v62 = vld [vmem:[%s7904_s0 + $0x79] sm:$0xff] }
  0x15   :  { %v213_v14 = vsub.f32 %v7021_v0, %v7042_v6  ;;  %v223_v15 = vsub.f32 %v7024_v1, %v7045_v7  ;;  %v7072_v16 = vand.u32 4294901760, %v7048_v8  ;;  %v7075_v17 = vand.u32 4294901760, %v7051_v9 }
  0x16   :  { %6312 = vmatprep.subr.bf16.mxu1 %v7056_v10  ;;  %v839_v18 = vsub.f32 %v7037_v5, %v7059_v11  ;;  %v7081_v19 = vand.u32 4294901760, %v7062_v12  ;;  %v7084_v20 = vand.u32 4294901760, %v7065_v13  ;;  %v7087_v21 = vsub.f32 %v765_v63, %v7034_v4  ;;  %v78_v63 = vld [vmem:[%s7904_s0 + $0x81] sm:$0xff] }
  0x17   :  { %v214_v22 = vand.u32 4294901760, %v213_v14  ;;  %v224_v23 = vand.u32 4294901760, %v223_v15  ;;  %v849_v24 = vsub.f32 %v7048_v8, %v7072_v16  ;;  %v233_v25 = vsub.f32 %v7051_v9, %v7075_v17 }
  0x18   :  { %v840_v27 = vand.u32 4294901760, %v839_v18  ;;  %v243_v28 = vsub.f32 %v7062_v12, %v7081_v19  ;;  %v859_v29 = vsub.f32 %v7065_v13, %v7084_v20  ;;  %v7098_v30 = vand.u32 4294901760, %v7087_v21 }
  0x19   :  { %5595 = vmatprep.mubr.f32.mxu0 %v214_v22  ;;  %v6267_v31 = vpack.c.bf16 %v224_v23, %v214_v22  ;;  %v850_v32 = vand.u32 4294901760, %v849_v24  ;;  %v234_v36 = vand.u32 4294901760, %v233_v25  ;;  %v6275_v44 = vpack.c.bf16 %v7024_v1, %v7021_v0 }
  0x1a   :  { %5679 = vmatprep.mubr.f32.mxu1 %v840_v27  ;;  %v869_v33 = vsub.f32 %v7087_v21, %v7098_v30  ;;  %v244_v37 = vand.u32 4294901760, %v243_v28  ;;  %v860_v38 = vand.u32 4294901760, %v859_v29  ;;  %v6323_v45 = vpack.c.bf16 %v7048_v8, %v7037_v5 }
  0x1b   :  { %6266 = vmatpush3.bf16.xpose.msra.mxu0 %v7030_v2  ;;  %6314 = vmatpush3.bf16.xpose.msra.mxu1 %v7056_v10  ;;  %v6315_v34 = vpack.c.bf16 %v850_v32, %v840_v27  ;;  %v6279_v46 = vpack.c.bf16 %v7062_v12, %v7051_v9  ;;  %v6327_v47 = vpack.c.bf16 %v7087_v21, %v7065_v13 }
  0x1c   :  { %6268 = vmatprep.subr.bf16.mxu0 %v6267_v31  ;;  %v870_v39 = vand.u32 4294901760, %v869_v33  ;;  %v6271_v40 = vpack.c.bf16 %v244_v37, %v234_v36  ;;  %v6291_v52 = vpack.c.bf16 %v7045_v7, %v7042_v6  ;;  %v6339_v53 = vpack.c.bf16 %v7072_v16, %v7059_v11 }
  0x1d   :  { %6316 = vmatprep.subr.bf16.mxu1 %v6315_v34  ;;  %v6295_v54 = vpack.c.bf16 %v7081_v19, %v7075_v17  ;;  %v6343_v55 = vpack.c.bf16 %v7098_v30, %v7084_v20 }
  0x1e   :  { %v6319_v42 = vpack.c.bf16 %v870_v39, %v860_v38 }
  0x22   :  { %5596 = vmatmul.mubr.f32.vlgmr.msra.gmra.mrb[0].mxu0 %v224_v23  ;;  %5680 = vmatmul.mubr.f32.vlgmr.msra.gmra.mrb[0].mxu1 %v850_v32 }
  0x23   :  { %6270 = vmatpush3.bf16.xpose.msra.mxu0 %v6267_v31  ;;  %6318 = vmatpush3.bf16.xpose.msra.mxu1 %v6315_v34 }
  0x24   :  { %6272 = vmatprep.subr.bf16.mxu0 %v6271_v40  ;;  %6320 = vmatprep.subr.bf16.mxu1 %v6319_v42 }
  0x25   :  { %5598 = vmatprep.mubr.f32.mxu0 %v234_v36  ;;  %5682 = vmatprep.mubr.f32.mxu1 %v860_v38 }
  0x26   :  { %5599 = vmatmul.mubr.f32.gmra.mrb[2].mxu0 %v244_v37  ;;  %5683 = vmatmul.mubr.f32.gmra.mrb[2].mxu1 %v870_v39 }
  0x27   :  { %5609 = vmatprep.mubr.f32.mxu0 %v6970_v41  ;;  %5693 = vmatprep.mubr.f32.mxu1 %v6974_v43 }
  0x2b   :  { %6274 = vmatpush3.bf16.xpose.msra.mxu0 %v6271_v40  ;;  %6322 = vmatpush3.bf16.xpose.msra.mxu1 %v6319_v42 }
  0x2c   :  { %6276 = vmatprep.subr.bf16.mxu0 %v6275_v44  ;;  %6324 = vmatprep.subr.bf16.mxu1 %v6323_v45 }
  0x32   :  { %5610 = vmatmul.mubr.f32.vlgmr.msra.gmra.mrb[0].mxu0 %v6992_v50  ;;  %5694 = vmatmul.mubr.f32.vlgmr.msra.gmra.mrb[0].mxu1 %v6994_v51 }
  0x33   :  { %6278 = vmatpush3.bf16.xpose.msra.mxu0 %v6275_v44  ;;  %6326 = vmatpush3.bf16.xpose.msra.mxu1 %v6323_v45 }
  0x34   :  { %6280 = vmatprep.subr.bf16.mxu0 %v6279_v46  ;;  %6328 = vmatprep.subr.bf16.mxu1 %v6327_v47 }
  0x35   :  { %5612 = vmatprep.mubr.f32.mxu0 %v7014_v60  ;;  %5696 = vmatprep.mubr.f32.mxu1 %v7032_v3 }
  0x36   :  { %5613 = vmatmul.mubr.f32.gmra.mrb[2].mxu0 %v7016_v61  ;;  %5697 = vmatmul.mubr.f32.gmra.mrb[2].mxu1 %v7034_v4 }
  0x37   :  { %5623 = vmatprep.mubr.f32.mxu0 %v7021_v0  ;;  %5707 = vmatprep.mubr.f32.mxu1 %v7037_v5  ;;  %v105_v0 = vsel %vm6940_vm8, %v73_v56, 0.0  ;;  %v109_v5 = vsel %vm6940_vm8, %v77_v62, 0.0 }
  0x3b   :  { %6282 = vmatpush3.bf16.xpose.msra.mxu0 %v6279_v46  ;;  %6330 = vmatpush3.bf16.xpose.msra.mxu1 %v6327_v47 }
  0x3c   :  { %6284 = vmatprep.subr.bf16.mxu0 %v7008_v58  ;;  %6332 = vmatprep.subr.bf16.mxu1 %v7012_v59 }
  0x42   :  { %5624 = vmatmul.mubr.f32.vlgmr.msra.gmra.mrb[0].mxu0 %v7024_v1  ;;  %5708 = vmatmul.mubr.f32.vlgmr.msra.gmra.mrb[0].mxu1 %v7048_v8  ;;  %v106_v1 = vsel %vm6955_vm9, %v74_v57, 0.0 }
  0x43   :  { %6286 = vmatpush3.bf16.xpose.msra.mxu0 %v7008_v58  ;;  %6334 = vmatpush3.bf16.xpose.msra.mxu1 %v7012_v59  ;;  %v1385_v8 = vsel %vm50_vm7, %v106_v1, 0 }
  0x44   :  { %6288 = vmatprep.subr.bf16.mxu0 %v7030_v2  ;;  %6336 = vmatprep.subr.bf16.mxu1 %v7056_v10  ;;  %v7194_v15 = vand.u32 4294901760, %v1385_v8 }
  0x45   :  { %5626 = vmatprep.mubr.f32.mxu0 %v7051_v9  ;;  %5710 = vmatprep.mubr.f32.mxu1 %v7065_v13  ;;  %v2008_v9 = vsel %vm50_vm7, %v109_v5, 0  ;;  %v76_v13 = vld [vmem:[%s7904_s0 + $0x69] sm:$0xff] }
  0x46   :  { %5627 = vmatmul.mubr.f32.gmra.mrb[2].mxu0 %v7062_v12  ;;  %5711 = vmatmul.mubr.f32.gmra.mrb[2].mxu1 %v7087_v21  ;;  %v75_v12 = vld [vmem:[%s7904_s0 + $0x61] sm:$0xff]  ;;  %v7224_v23 = vsub.f32 %v1385_v8, %v7194_v15 }
  0x47   :  { %5637 = vmatprep.mubr.f32.mxu0 %v7042_v6  ;;  %5721 = vmatprep.mubr.f32.mxu1 %v7059_v11  ;;  %v110_v6 = vsel %vm6955_vm9, %v78_v63, 0.0  ;;  %v107_v18 = vsel %vm6984_vm10, %v75_v12, 0.0 }
  0x48   :  { %v2011_v11 = vsel %vm50_vm7, %v110_v6, 0  ;;  %v1388_v27 = vsel %vm50_vm7, %v107_v18, 0  ;;  %v7250_v32 = vand.u32 4294901760, %v7224_v23 }
  0x49   :  { %v7260_v36 = vand.u32 4294901760, %v1388_v27 }
  0x4a   :  { %v1475_v39 = vsub.f32 %v7224_v23, %v7250_v32 }
  0x4b   :  { %6290 = vmatpush3.bf16.xpose.msra.mxu0 %v7030_v2  ;;  %6338 = vmatpush3.bf16.xpose.msra.mxu1 %v7056_v10  ;;  %v7273_v40 = vsub.f32 %v1388_v27, %v7260_v36 }
  0x4c   :  { %6292 = vmatprep.subr.bf16.mxu0 %v6291_v52  ;;  %6340 = vmatprep.subr.bf16.mxu1 %v6339_v53 }
  0x4d   :  { %v7301_v56 = vand.u32 4294901760, %v7273_v40 }
  0x52   :  { %5638 = vmatmul.mubr.f32.vlgmr.msra.gmra.mrb[0].mxu0 %v7045_v7  ;;  %5722 = vmatmul.mubr.f32.vlgmr.msra.gmra.mrb[0].mxu1 %v7072_v16  ;;  %v1382_v7 = vsel %vm50_vm7, %v105_v0, 0  ;;  %v7196_v16 = vand.u32 4294901760, %v2008_v9 }
  0x53   :  { %6294 = vmatpush3.bf16.xpose.msra.mxu0 %v6291_v52  ;;  %6342 = vmatpush3.bf16.xpose.msra.mxu1 %v6339_v53  ;;  %v7192_v14 = vand.u32 4294901760, %v1382_v7 }
  0x54   :  { %6296 = vmatprep.subr.bf16.mxu0 %v6295_v54  ;;  %6344 = vmatprep.subr.bf16.mxu1 %v6343_v55 }
  0x55   :  { %5640 = vmatprep.mubr.f32.mxu0 %v7075_v17  ;;  %5724 = vmatprep.mubr.f32.mxu1 %v7084_v20  ;;  %v80_v17 = vld [vmem:[%s7904_s0 + $0x91] sm:$0xff]  ;;  %v7221_v22 = vsub.f32 %v1382_v7, %v7192_v14  ;;  %v7228_v24 = vpack.c.bf16 %v7194_v15, %v7192_v14 }
  0x56   :  { %5641 = vmatmul.mubr.f32.gmra.mrb[2].mxu0 %v7081_v19  ;;  %5725 = vmatmul.mubr.f32.gmra.mrb[2].mxu1 %v7098_v30  ;;  %v108_v19 = vsel %vm6988_vm11, %v76_v13, 0.0  ;;  %v112_v21 = vsel %vm6988_vm11, %v80_v17, 0.0 }
  0x57   :  { %5651 = vmatprep.mubr.f32.mxu0 %v6970_v41  ;;  %5735 = vmatprep.mubr.f32.mxu1 %v6974_v43  ;;  %v1391_v28 = vsel %vm50_vm7, %v108_v19, 0  ;;  %v2017_v30 = vsel %vm50_vm7, %v112_v21, 0  ;;  %v7247_v31 = vand.u32 4294901760, %v7221_v22  ;;  %v6371_v12 = vpack.c.bf16 %v7224_v23, %v7221_v22 }
  0x58   :  { %v7266_v37 = vand.u32 4294901760, %v2017_v30 }
  0x59   :  { %v1465_v38 = vsub.f32 %v7221_v22, %v7247_v31  ;;  %v6387_v18 = vpack.c.bf16 %v7250_v32, %v7247_v31 }
  0x5a   :  { %v7286_v47 = vsub.f32 %v2017_v30, %v7266_v37 }
  0x5b   :  { %6298 = vmatpush3.bf16.xpose.msra.mxu0 %v6295_v54  ;;  %6346 = vmatpush3.bf16.xpose.msra.mxu1 %v6343_v55  ;;  %v1466_v54 = vand.u32 4294901760, %v1465_v38  ;;  %v1476_v55 = vand.u32 4294901760, %v1475_v39  ;;  %v83_v38 = vld [vmem:[%s7904_s0 + $0xb1] sm:$0xff]  ;;  %v84_v39 = vld [vmem:[%s7904_s0 + $0xb9] sm:$0xff] }
  0x5c   :  { %6300 = vmatprep.subr.bf16.mxu0 %v7008_v58  ;;  %6348 = vmatprep.subr.bf16.mxu1 %v7012_v59  ;;  %v7312_v63 = vand.u32 4294901760, %v7286_v47 }
  0x5d   :  { %v6363_v0 = vpack.c.bf16 %v1476_v55, %v1466_v54 }
  0x5e   :  { %v2121_v6 = vsub.f32 %v7286_v47, %v7312_v63 }
  0x60   :  { %v2122_v8 = vand.u32 4294901760, %v2121_v6 }
  0x62   :  { %5652 = vmatmul.mubr.f32.vlgmr.msra.gmra.mrb[0].mxu0 %v6992_v50  ;;  %5736 = vmatmul.mubr.f32.vlgmr.msra.gmra.mrb[0].mxu1 %v6994_v51 }
  0x63   :  { %6302 = vmatpush3.bf16.xpose.msra.mxu0 %v7008_v58  ;;  %6350 = vmatpush3.bf16.xpose.msra.mxu1 %v7012_v59  ;;  %v7198_v58 = vand.u32 4294901760, %v2011_v11  ;;  %v79_v59 = vld [vmem:[%s7904_s0 + $0x89] sm:$0xff] }
  0x64   :  { %6304 = vmatprep.subr.bf16.mxu0 %v7030_v2  ;;  %6352 = vmatprep.subr.bf16.mxu1 %v7056_v10  ;;  %v111_v20 = vsel %vm6984_vm10, %v79_v59, 0.0 }
  0x65   :  { %5654 = vmatprep.mubr.f32.mxu0 %v7014_v60  ;;  %5738 = vmatprep.mubr.f32.mxu1 %v7032_v3  ;;  %v7238_v25 = vsub.f32 %v2011_v11, %v7198_v58  ;;  %v2014_v29 = vsel %vm50_vm7, %v111_v20, 0 }
  0x66   :  { %5655 = vmatmul.mubr.f32.gmra.mrb[2].mxu0 %v7016_v61  ;;  %5739 = vmatmul.mubr.f32.gmra.mrb[2].mxu1 %v7034_v4 }
  0x67   :  { %5665 = vmatprep.mubr.f32.mxu0 %v6970_v41  ;;  %5749 = vmatprep.mubr.f32.mxu1 %v6974_v43  ;;  %v7232_v41 = vpack.c.bf16 %v7198_v58, %v7196_v16  ;;  %v7235_v43 = vsub.f32 %v2008_v9, %v7196_v16  ;;  %v7258_v34 = vand.u32 4294901760, %v7238_v25 }
  0x69   :  { %v7255_v33 = vand.u32 4294901760, %v7235_v43  ;;  %v2101_v45 = vsub.f32 %v7238_v25, %v7258_v34  ;;  %v6419_v13 = vpack.c.bf16 %v7238_v25, %v7235_v43 }
  0x6b   :  { %6306 = vmatpush3.bf16.xpose.msra.mxu0 %v7030_v2  ;;  %6354 = vmatpush3.bf16.xpose.msra.mxu1 %v7056_v10  ;;  %v7262_v2 = vand.u32 4294901760, %v1391_v28  ;;  %v7264_v10 = vand.u32 4294901760, %v2014_v29  ;;  %v2091_v44 = vsub.f32 %v7235_v43, %v7255_v33  ;;  %v6435_v19 = vpack.c.bf16 %v7258_v34, %v7255_v33 }
  0x6c   :  { %6356 = vmatprep.subr.bf16.mxu0 %v7228_v24  ;;  %6404 = vmatprep.subr.bf16.mxu1 %v7232_v41 }
  0x6d   :  { %v7276_v42 = vsub.f32 %v1391_v28, %v7262_v2  ;;  %v7283_v46 = vsub.f32 %v2014_v29, %v7264_v10  ;;  %v7290_v52 = vpack.c.bf16 %v7262_v2, %v7260_v36  ;;  %v7294_v53 = vpack.c.bf16 %v7266_v37, %v7264_v10 }
  0x6e   :  { %v2092_v62 = vand.u32 4294901760, %v2091_v44 }
  0x6f   :  { %v7304_v57 = vand.u32 4294901760, %v7276_v42  ;;  %v6375_v59 = vpack.c.bf16 %v7276_v42, %v7273_v40  ;;  %v6423_v17 = vpack.c.bf16 %v7286_v47, %v7283_v46 }
  0x71   :  { %v6391_v20 = vpack.c.bf16 %v7304_v57, %v7301_v56 }
  0x72   :  { %5666 = vmatmul.mubr.f32.vlgmr.msra.gmra.mrb[0].mxu0 %v6992_v50  ;;  %5750 = vmatmul.mubr.f32.vlgmr.msra.gmra.mrb[0].mxu1 %v6994_v51  ;;  %v2102_v50 = vand.u32 4294901760, %v2101_v45  ;;  %v7309_v51 = vand.u32 4294901760, %v7283_v46  ;;  %v88_v45 = vld [vmem:[%s7904_s0 + $0xe1] sm:$0xff] }
  0x73   :  { %6358 = vmatpush3.bf16.xpose.msra.mxu0 %v7228_v24  ;;  %6406 = vmatpush3.bf16.xpose.msra.mxu1 %v7232_v41 }
  0x74   :  { %5668 = vmatprep.mubr.f32.mxu0 %v7014_v60  ;;  %5752 = vmatprep.mubr.f32.mxu1 %v7032_v3  ;;  %v1485_v60 = vsub.f32 %v7273_v40, %v7301_v56  ;;  %v1495_v3 = vsub.f32 %v7276_v42, %v7304_v57  ;;  %v6411_v1 = vpack.c.bf16 %v2102_v50, %v2092_v62 }
  0x75   :  { %6360 = vmatprep.subr.bf16.mxu0 %v7290_v52  ;;  %6408 = vmatprep.subr.bf16.mxu1 %v7294_v53  ;;  %v2111_v5 = vsub.f32 %v7283_v46, %v7309_v51  ;;  %v6439_v21 = vpack.c.bf16 %v7312_v63, %v7309_v51 }
  0x76   :  { %5669 = vmatmul.mubr.f32.gmra.mrb[2].mxu0 %v7016_v61  ;;  %5753 = vmatmul.mubr.f32.gmra.mrb[2].mxu1 %v7034_v4  ;;  %v1486_v61 = vand.u32 4294901760, %v1485_v60  ;;  %v1496_v4 = vand.u32 4294901760, %v1495_v3 }
  0x77   :  { %5763 = vmatprep.mubr.f32.mxu0 %v1466_v54  ;;  %5847 = vmatprep.mubr.f32.mxu1 %v2092_v62  ;;  %v2112_v7 = vand.u32 4294901760, %v2111_v5 }
  0x78   :  { %v6367_v9 = vpack.c.bf16 %v1496_v4, %v1486_v61 }
  0x79   :  { %v6415_v11 = vpack.c.bf16 %v2122_v8, %v2112_v7 }
  0x7b   :  { %6362 = vmatpush3.bf16.xpose.msra.mxu0 %v7290_v52  ;;  %6410 = vmatpush3.bf16.xpose.msra.mxu1 %v7294_v53 }
  0x7c   :  { %6364 = vmatprep.subr.bf16.mxu0 %v6363_v0  ;;  %6412 = vmatprep.subr.bf16.mxu1 %v6411_v1 }
  0x82   :  { %5764 = vmatmul.mubr.f32.vlgmr.msra.gmra.mrb[4].mxu0 %v1476_v55  ;;  %5848 = vmatmul.mubr.f32.vlgmr.msra.gmra.mrb[4].mxu1 %v2102_v50 }
  0x83   :  { %6366 = vmatpush3.bf16.xpose.msra.mxu0 %v6363_v0  ;;  %6414 = vmatpush3.bf16.xpose.msra.mxu1 %v6411_v1 }
  0x84   :  { %6368 = vmatprep.subr.bf16.mxu0 %v6367_v9  ;;  %6416 = vmatprep.subr.bf16.mxu1 %v6415_v11 }
  0x85   :  { %5766 = vmatprep.mubr.f32.mxu0 %v1486_v61  ;;  %5850 = vmatprep.mubr.f32.mxu1 %v2112_v7 }
  0x86   :  { %5767 = vmatmul.mubr.f32.gmra.mrb[6].mxu0 %v1496_v4  ;;  %5851 = vmatmul.mubr.f32.gmra.mrb[6].mxu1 %v2122_v8 }
  0x87   :  { %5777 = vmatprep.mubr.f32.mxu0 %v7192_v14  ;;  %5861 = vmatprep.mubr.f32.mxu1 %v7196_v16 }
  0x8b   :  { %6370 = vmatpush3.bf16.xpose.msra.mxu0 %v6367_v9  ;;  %6418 = vmatpush3.bf16.xpose.msra.mxu1 %v6415_v11 }
  0x8c   :  { %6372 = vmatprep.subr.bf16.mxu0 %v6371_v12  ;;  %6420 = vmatprep.subr.bf16.mxu1 %v6419_v13 }
  0x92   :  { %5778 = vmatmul.mubr.f32.vlgmr.msra.gmra.mrb[4].mxu0 %v7194_v15  ;;  %5862 = vmatmul.mubr.f32.vlgmr.msra.gmra.mrb[4].mxu1 %v7198_v58 }
  0x93   :  { %6374 = vmatpush3.bf16.xpose.msra.mxu0 %v6371_v12  ;;  %6422 = vmatpush3.bf16.xpose.msra.mxu1 %v6419_v13 }
  0x94   :  { %6376 = vmatprep.subr.bf16.mxu0 %v6375_v59  ;;  %6424 = vmatprep.subr.bf16.mxu1 %v6423_v17 }
  0x95   :  { %5780 = vmatprep.mubr.f32.mxu0 %v7260_v36  ;;  %5864 = vmatprep.mubr.f32.mxu1 %v7264_v10 }
  0x96   :  { %5781 = vmatmul.mubr.f32.gmra.mrb[6].mxu0 %v7262_v2  ;;  %5865 = vmatmul.mubr.f32.gmra.mrb[6].mxu1 %v7266_v37 }
  0x97   :  { %5791 = vmatprep.mubr.f32.mxu0 %v7221_v22  ;;  %5875 = vmatprep.mubr.f32.mxu1 %v7235_v43  ;;  %v81_v22 = vld [vmem:[%s7904_s0 + $0xa1] sm:$0xff]  ;;  %v85_v43 = vld [vmem:[%s7904_s0 + $0xc9] sm:$0xff] }
  0x98   :  { %v113_v27 = vsel %vm6940_vm8, %v81_v22, 0.0  ;;  %v117_v29 = vsel %vm6940_vm8, %v85_v43, 0.0 }
  0x9b   :  { %6378 = vmatpush3.bf16.xpose.msra.mxu0 %v6375_v59  ;;  %6426 = vmatpush3.bf16.xpose.msra.mxu1 %v6423_v17 }
  0x9c   :  { %6380 = vmatprep.subr.bf16.mxu0 %v7228_v24  ;;  %6428 = vmatprep.subr.bf16.mxu1 %v7232_v41 }
  0xa2   :  { %5792 = vmatmul.mubr.f32.vlgmr.msra.gmra.mrb[4].mxu0 %v7224_v23  ;;  %5876 = vmatmul.mubr.f32.vlgmr.msra.gmra.mrb[4].mxu1 %v7238_v25  ;;  %v82_v23 = vld [vmem:[%s7904_s0 + $0xa9] sm:$0xff]  ;;  %v86_v25 = vld [vmem:[%s7904_s0 + $0xd1] sm:$0xff] }
  0xa3   :  { %6382 = vmatpush3.bf16.xpose.msra.mxu0 %v7228_v24  ;;  %6430 = vmatpush3.bf16.xpose.msra.mxu1 %v7232_v41  ;;  %v114_v28 = vsel %vm6955_vm9, %v82_v23, 0.0  ;;  %v118_v30 = vsel %vm6955_vm9, %v86_v25, 0.0 }
  0xa4   :  { %6384 = vmatprep.subr.bf16.mxu0 %v7290_v52  ;;  %6432 = vmatprep.subr.bf16.mxu1 %v7294_v53 }
  0xa5   :  { %5794 = vmatprep.mubr.f32.mxu0 %v7273_v40  ;;  %5878 = vmatprep.mubr.f32.mxu1 %v7283_v46  ;;  %v87_v40 = vld [vmem:[%s7904_s0 + $0xd9] sm:$0xff]  ;;  %v115_v46 = vsel %vm6984_vm10, %v83_v38, 0.0 }
  0xa6   :  { %5795 = vmatmul.mubr.f32.gmra.mrb[6].mxu0 %v7276_v42  ;;  %5879 = vmatmul.mubr.f32.gmra.mrb[6].mxu1 %v7286_v47  ;;  %v116_v47 = vsel %vm6988_vm11, %v84_v39, 0.0  ;;  %v119_v54 = vsel %vm6984_vm10, %v87_v40, 0.0 }
  0xa7   :  { %5805 = vmatprep.mubr.f32.mxu0 %v7247_v31  ;;  %5889 = vmatprep.mubr.f32.mxu1 %v7255_v33  ;;  %v2634_v31 = vsel %vm50_vm7, %v113_v27, 0  ;;  %v3260_v33 = vsel %vm50_vm7, %v117_v29, 0  ;;  %v3266_v60 = vsel %vm50_vm7, %v119_v54, 0 }
  0xa8   :  { %v7419_v42 = vand.u32 4294901760, %v2634_v31 }
  0xaa   :  { %v7441_v55 = vsub.f32 %v2634_v31, %v7419_v42 }
  0xab   :  { %6386 = vmatpush3.bf16.xpose.msra.mxu0 %v7290_v52  ;;  %6434 = vmatpush3.bf16.xpose.msra.mxu1 %v7294_v53 }
  0xac   :  { %6388 = vmatprep.subr.bf16.mxu0 %v6387_v18  ;;  %6436 = vmatprep.subr.bf16.mxu1 %v6435_v19  ;;  %v7471_v0 = vand.u32 4294901760, %v7441_v55 }
  0xae   :  { %v2717_v7 = vsub.f32 %v7441_v55, %v7471_v0 }
  0xb2   :  { %5806 = vmatmul.mubr.f32.vlgmr.msra.gmra.mrb[4].mxu0 %v7250_v32  ;;  %5890 = vmatmul.mubr.f32.vlgmr.msra.gmra.mrb[4].mxu1 %v7258_v34  ;;  %v2637_v32 = vsel %vm50_vm7, %v114_v28, 0  ;;  %v3263_v34 = vsel %vm50_vm7, %v118_v30, 0 }
  0xb3   :  { %6390 = vmatpush3.bf16.xpose.msra.mxu0 %v6387_v18  ;;  %6438 = vmatpush3.bf16.xpose.msra.mxu1 %v6435_v19  ;;  %v7425_v44 = vand.u32 4294901760, %v3263_v34 }
  0xb4   :  { %6392 = vmatprep.subr.bf16.mxu0 %v6391_v20  ;;  %6440 = vmatprep.subr.bf16.mxu1 %v6439_v21 }
  0xb5   :  { %5808 = vmatprep.mubr.f32.mxu0 %v7301_v56  ;;  %5892 = vmatprep.mubr.f32.mxu1 %v7309_v51  ;;  %v120_v56 = vsel %vm6988_vm11, %v88_v45, 0.0  ;;  %v7454_v50 = vsub.f32 %v3263_v34, %v7425_v44 }
  0xb6   :  { %5809 = vmatmul.mubr.f32.gmra.mrb[6].mxu0 %v7304_v57  ;;  %5893 = vmatmul.mubr.f32.gmra.mrb[6].mxu1 %v7312_v63  ;;  %v2643_v63 = vsel %vm50_vm7, %v116_v47, 0  ;;  %v3269_v3 = vsel %vm50_vm7, %v120_v56, 0  ;;  %v89_v56 = vld [vmem:[%s7904_s0 + $0xf1] sm:$0xff] }
  0xb7   :  { %5819 = vmatprep.mubr.f32.mxu0 %v7192_v14  ;;  %5903 = vmatprep.mubr.f32.mxu1 %v7196_v16  ;;  %v7480_v6 = vand.u32 4294901760, %v7454_v50  ;;  %v7490_v4 = vand.u32 4294901760, %v3269_v3 }
  0xb9   :  { %v3353_v11 = vsub.f32 %v7454_v50, %v7480_v6  ;;  %v7510_v17 = vsub.f32 %v3269_v3, %v7490_v4 }
  0xbb   :  { %6394 = vmatpush3.bf16.xpose.msra.mxu0 %v6391_v20  ;;  %6442 = vmatpush3.bf16.xpose.msra.mxu1 %v6439_v21  ;;  %v2718_v20 = vand.u32 4294901760, %v2717_v7  ;;  %v3354_v23 = vand.u32 4294901760, %v3353_v11  ;;  %v95_v7 = vld [vmem:[%s7904_s0 + $0x129] sm:$0xff]  ;;  %v96_v11 = vld [vmem:[%s7904_s0 + $0x131] sm:$0xff] }
  0xbc   :  { %6396 = vmatprep.subr.bf16.mxu0 %v7228_v24  ;;  %6444 = vmatprep.subr.bf16.mxu1 %v7232_v41 }
  0xc2   :  { %5820 = vmatmul.mubr.f32.vlgmr.msra.gmra.mrb[4].mxu0 %v7194_v15  ;;  %5904 = vmatmul.mubr.f32.vlgmr.msra.gmra.mrb[4].mxu1 %v7198_v58 }
  0xc3   :  { %6398 = vmatpush3.bf16.xpose.msra.mxu0 %v7228_v24  ;;  %6446 = vmatpush3.bf16.xpose.msra.mxu1 %v7232_v41  ;;  %v7421_v24 = vand.u32 4294901760, %v2637_v32  ;;  %v7423_v41 = vand.u32 4294901760, %v3260_v33 }
  0xc4   :  { %6400 = vmatprep.subr.bf16.mxu0 %v7290_v52  ;;  %6448 = vmatprep.subr.bf16.mxu1 %v7294_v53 }
  0xc5   :  { %5822 = vmatprep.mubr.f32.mxu0 %v7260_v36  ;;  %5906 = vmatprep.mubr.f32.mxu1 %v7264_v10  ;;  %v7448_v57 = vsub.f32 %v2637_v32, %v7421_v24  ;;  %v7451_v62 = vsub.f32 %v3260_v33, %v7423_v41  ;;  %v7458_v51 = vpack.c.bf16 %v7421_v24, %v7419_v42 }
  0xc6   :  { %5823 = vmatmul.mubr.f32.gmra.mrb[6].mxu0 %v7262_v2  ;;  %5907 = vmatmul.mubr.f32.gmra.mrb[6].mxu1 %v7266_v37 }
  0xc7   :  { %5833 = vmatprep.mubr.f32.mxu0 %v7192_v14  ;;  %5917 = vmatprep.mubr.f32.mxu1 %v7196_v16  ;;  %v7462_v14 = vpack.c.bf16 %v7425_v44, %v7423_v41  ;;  %v2640_v16 = vsel %vm50_vm7, %v115_v46, 0  ;;  %v7474_v1 = vand.u32 4294901760, %v7448_v57  ;;  %v7477_v5 = vand.u32 4294901760, %v7451_v62 }
  0xc8   :  { %v7484_v61 = vand.u32 4294901760, %v2640_v16  ;;  %v6467_v38 = vpack.c.bf16 %v7448_v57, %v7441_v55  ;;  %v6515_v39 = vpack.c.bf16 %v7454_v50, %v7451_v62 }
  0xc9   :  { %v2727_v8 = vsub.f32 %v7448_v57, %v7474_v1  ;;  %v3343_v9 = vsub.f32 %v7451_v62, %v7477_v5  ;;  %v6483_v46 = vpack.c.bf16 %v7474_v1, %v7471_v0  ;;  %v6531_v47 = vpack.c.bf16 %v7480_v6, %v7477_v5 }
  0xca   :  { %v7501_v12 = vsub.f32 %v2640_v16, %v7484_v61  ;;  %v121_v16 = vsel %vm6940_vm8, %v89_v56, 0.0 }
  0xcb   :  { %6402 = vmatpush3.bf16.xpose.msra.mxu0 %v7290_v52  ;;  %6450 = vmatpush3.bf16.xpose.msra.mxu1 %v7294_v53  ;;  %v7486_v52 = vand.u32 4294901760, %v2643_v63  ;;  %v7488_v53 = vand.u32 4294901760, %v3266_v60  ;;  %v2728_v21 = vand.u32 4294901760, %v2727_v8  ;;  %v3344_v22 = vand.u32 4294901760, %v3343_v9 }
  0xcc   :  { %6452 = vmatprep.subr.bf16.mxu0 %v7458_v51  ;;  %6500 = vmatprep.subr.bf16.mxu1 %v7462_v14  ;;  %v7527_v43 = vand.u32 4294901760, %v7501_v12 }
  0xcd   :  { %v7504_v13 = vsub.f32 %v2643_v63, %v7486_v52  ;;  %v7507_v59 = vsub.f32 %v3266_v60, %v7488_v53  ;;  %v7514_v18 = vpack.c.bf16 %v7486_v52, %v7484_v61  ;;  %v7518_v19 = vpack.c.bf16 %v7490_v4, %v7488_v53 }
  0xce   :  { %v2737_v27 = vsub.f32 %v7501_v12, %v7527_v43 }
  0xcf   :  { %v7530_v25 = vand.u32 4294901760, %v7504_v13  ;;  %v6471_v40 = vpack.c.bf16 %v7504_v13, %v7501_v12  ;;  %v6519_v45 = vpack.c.bf16 %v7510_v17, %v7507_v59 }
  0xd1   :  { %v2747_v28 = vsub.f32 %v7504_v13, %v7530_v25  ;;  %v6487_v54 = vpack.c.bf16 %v7530_v25, %v7527_v43 }
  0xd2   :  { %5834 = vmatmul.mubr.f32.vlgmr.msra.gmra.mrb[4].mxu0 %v7194_v15  ;;  %5918 = vmatmul.mubr.f32.vlgmr.msra.gmra.mrb[4].mxu1 %v7198_v58  ;;  %v7533_v15 = vand.u32 4294901760, %v7507_v59  ;;  %v7536_v58 = vand.u32 4294901760, %v7510_v17 }
  0xd3   :  { %6454 = vmatpush3.bf16.xpose.msra.mxu0 %v7458_v51  ;;  %6502 = vmatpush3.bf16.xpose.msra.mxu1 %v7462_v14 }
  0xd4   :  { %5836 = vmatprep.mubr.f32.mxu0 %v7260_v36  ;;  %5920 = vmatprep.mubr.f32.mxu1 %v7264_v10  ;;  %v6459_v36 = vpack.c.bf16 %v2728_v21, %v2718_v20  ;;  %v6507_v10 = vpack.c.bf16 %v3354_v23, %v3344_v22  ;;  %v3363_v29 = vsub.f32 %v7507_v59, %v7533_v15 }
  0xd5   :  { %6456 = vmatprep.subr.bf16.mxu0 %v7514_v18  ;;  %6504 = vmatprep.subr.bf16.mxu1 %v7518_v19  ;;  %v3373_v30 = vsub.f32 %v7510_v17, %v7536_v58 }
  0xd6   :  { %5837 = vmatmul.mubr.f32.gmra.mrb[6].mxu0 %v7262_v2  ;;  %5921 = vmatmul.mubr.f32.gmra.mrb[6].mxu1 %v7266_v37  ;;  %v2738_v2 = vand.u32 4294901760, %v2737_v27  ;;  %v2748_v37 = vand.u32 4294901760, %v2747_v28  ;;  %v3364_v31 = vand.u32 4294901760, %v3363_v29 }
  0xd7   :  { %5931 = vmatprep.mubr.f32.mxu0 %v2718_v20  ;;  %6015 = vmatprep.mubr.f32.mxu1 %v3344_v22  ;;  %v3374_v32 = vand.u32 4294901760, %v3373_v30  ;;  %v128_v20 = vsel %vm6988_vm11, %v96_v11, 0.0 }
  0xd8   :  { %v6463_v33 = vpack.c.bf16 %v2748_v37, %v2738_v2 }
  0xd9   :  { %v6511_v34 = vpack.c.bf16 %v3374_v32, %v3364_v31 }
  0xdb   :  { %6458 = vmatpush3.bf16.xpose.msra.mxu0 %v7514_v18  ;;  %6506 = vmatpush3.bf16.xpose.msra.mxu1 %v7518_v19 }
  0xdc   :  { %6460 = vmatprep.subr.bf16.mxu0 %v6459_v36  ;;  %6508 = vmatprep.subr.bf16.mxu1 %v6507_v10 }
  0xe2   :  { %5932 = vmatmul.mubr.f32.vlgmr.msra.gmra.mrb[8].mxu0 %v2728_v21  ;;  %6016 = vmatmul.mubr.f32.vlgmr.msra.gmra.mrb[8].mxu1 %v3354_v23 }
  0xe3   :  { %6462 = vmatpush3.bf16.xpose.msra.mxu0 %v6459_v36  ;;  %6510 = vmatpush3.bf16.xpose.msra.mxu1 %v6507_v10 }
  0xe4   :  { %6464 = vmatprep.subr.bf16.mxu0 %v6463_v33  ;;  %6512 = vmatprep.subr.bf16.mxu1 %v6511_v34 }
  0xe5   :  { %5934 = vmatprep.mubr.f32.mxu0 %v2738_v2  ;;  %6018 = vmatprep.mubr.f32.mxu1 %v3364_v31 }
  0xe6   :  { %5935 = vmatmul.mubr.f32.gmra.mrb[10].mxu0 %v2748_v37  ;;  %6019 = vmatmul.mubr.f32.gmra.mrb[10].mxu1 %v3374_v32 }
  0xe7   :  { %5945 = vmatprep.mubr.f32.mxu0 %v7419_v42  ;;  %6029 = vmatprep.mubr.f32.mxu1 %v7423_v41 }
  0xeb   :  { %6466 = vmatpush3.bf16.xpose.msra.mxu0 %v6463_v33  ;;  %6514 = vmatpush3.bf16.xpose.msra.mxu1 %v6511_v34 }
  0xec   :  { %6468 = vmatprep.subr.bf16.mxu0 %v6467_v38  ;;  %6516 = vmatprep.subr.bf16.mxu1 %v6515_v39 }
  0xf2   :  { %5946 = vmatmul.mubr.f32.vlgmr.msra.gmra.mrb[8].mxu0 %v7421_v24  ;;  %6030 = vmatmul.mubr.f32.vlgmr.msra.gmra.mrb[8].mxu1 %v7425_v44 }
  0xf3   :  { %6470 = vmatpush3.bf16.xpose.msra.mxu0 %v6467_v38  ;;  %6518 = vmatpush3.bf16.xpose.msra.mxu1 %v6515_v39 }
  0xf4   :  { %6472 = vmatprep.subr.bf16.mxu0 %v6471_v40  ;;  %6520 = vmatprep.subr.bf16.mxu1 %v6519_v45 }
  0xf5   :  { %5948 = vmatprep.mubr.f32.mxu0 %v7484_v61  ;;  %6032 = vmatprep.mubr.f32.mxu1 %v7488_v53 }
  0xf6   :  { %5949 = vmatmul.mubr.f32.gmra.mrb[10].mxu0 %v7486_v52  ;;  %6033 = vmatmul.mubr.f32.gmra.mrb[10].mxu1 %v7490_v4 }
  0xf7   :  { %5959 = vmatprep.mubr.f32.mxu0 %v7441_v55  ;;  %6043 = vmatprep.mubr.f32.mxu1 %v7451_v62  ;;  %v6535_v55 = vpack.c.bf16 %v7536_v58, %v7533_v15  ;;  %v93_v62 = vld [vmem:[%s7904_s0 + $0x119] sm:$0xff] }
  0xf8   :  { %v125_v60 = vsel %vm6940_vm8, %v93_v62, 0.0 }
  0xfb   :  { %6474 = vmatpush3.bf16.xpose.msra.mxu0 %v6471_v40  ;;  %6522 = vmatpush3.bf16.xpose.msra.mxu1 %v6519_v45 }
  0xfc   :  { %6476 = vmatprep.subr.bf16.mxu0 %v7458_v51  ;;  %6524 = vmatprep.subr.bf16.mxu1 %v7462_v14 }
 0x102   :  { %5960 = vmatmul.mubr.f32.vlgmr.msra.gmra.mrb[8].mxu0 %v7448_v57  ;;  %6044 = vmatmul.mubr.f32.vlgmr.msra.gmra.mrb[8].mxu1 %v7454_v50  ;;  %v90_v57 = vld [vmem:[%s7904_s0 + $0xf9] sm:$0xff]  ;;  %v94_v50 = vld [vmem:[%s7904_s0 + $0x121] sm:$0xff] }
 0x103   :  { %6478 = vmatpush3.bf16.xpose.msra.mxu0 %v7458_v51  ;;  %6526 = vmatpush3.bf16.xpose.msra.mxu1 %v7462_v14  ;;  %v122_v63 = vsel %vm6955_vm9, %v90_v57, 0.0  ;;  %v126_v3 = vsel %vm6955_vm9, %v94_v50, 0.0 }
 0x104   :  { %6480 = vmatprep.subr.bf16.mxu0 %v7514_v18  ;;  %6528 = vmatprep.subr.bf16.mxu1 %v7518_v19 }
 0x105   :  { %5962 = vmatprep.mubr.f32.mxu0 %v7501_v12  ;;  %6046 = vmatprep.mubr.f32.mxu1 %v7507_v59  ;;  %v123_v12 = vsel %vm6984_vm10, %v91_v26, 0.0  ;;  %v127_v59 = vsel %vm6984_vm10, %v95_v7, 0.0 }
 0x106   :  { %5963 = vmatmul.mubr.f32.gmra.mrb[10].mxu0 %v7504_v13  ;;  %6047 = vmatmul.mubr.f32.gmra.mrb[10].mxu1 %v7510_v17  ;;  %v124_v13 = vsel %vm6988_vm11, %v92_v35, 0.0  ;;  %v3892_v49 = vsel %vm50_vm7, %v123_v12, 0 }
 0x107   :  { %5973 = vmatprep.mubr.f32.mxu0 %v7471_v0  ;;  %6057 = vmatprep.mubr.f32.mxu1 %v7477_v5  ;;  %v3886_v0 = vsel %vm50_vm7, %v121_v16, 0  ;;  %v4512_v5 = vsel %vm50_vm7, %v125_v60, 0  ;;  %v7708_v27 = vand.u32 4294901760, %v3892_v49 }
 0x108   :  { %v7643_v8 = vand.u32 4294901760, %v3886_v0 }
 0x109   :  { %v7725_v31 = vsub.f32 %v3892_v49, %v7708_v27 }
 0x10a   :  { %v7665_v17 = vsub.f32 %v3886_v0, %v7643_v8 }
 0x10b   :  { %6482 = vmatpush3.bf16.xpose.msra.mxu0 %v7514_v18  ;;  %6530 = vmatpush3.bf16.xpose.msra.mxu1 %v7518_v19 }
 0x10c   :  { %6484 = vmatprep.subr.bf16.mxu0 %v6483_v46  ;;  %6532 = vmatprep.subr.bf16.mxu1 %v6531_v47 }
 0x112   :  { %5974 = vmatmul.mubr.f32.vlgmr.msra.gmra.mrb[8].mxu0 %v7474_v1  ;;  %6058 = vmatmul.mubr.f32.vlgmr.msra.gmra.mrb[8].mxu1 %v7480_v6  ;;  %v3889_v1 = vsel %vm50_vm7, %v122_v63, 0  ;;  %v4515_v6 = vsel %vm50_vm7, %v126_v3, 0 }
 0x113   :  { %6486 = vmatpush3.bf16.xpose.msra.mxu0 %v6483_v46  ;;  %6534 = vmatpush3.bf16.xpose.msra.mxu1 %v6531_v47  ;;  %v7649_v9 = vand.u32 4294901760, %v4515_v6 }
 0x114   :  { %6488 = vmatprep.subr.bf16.mxu0 %v6487_v54  ;;  %6536 = vmatprep.subr.bf16.mxu1 %v6535_v55 }
 0x115   :  { %5976 = vmatprep.mubr.f32.mxu0 %v7527_v43  ;;  %6060 = vmatprep.mubr.f32.mxu1 %v7533_v15  ;;  %v7678_v23 = vsub.f32 %v4515_v6, %v7649_v9  ;;  %v4518_v43 = vsel %vm50_vm7, %v127_v59, 0  ;;  %v7695_v15 = vand.u32 4294901760, %v7665_v17 }
 0x116   :  { %5977 = vmatmul.mubr.f32.gmra.mrb[10].mxu0 %v7530_v25  ;;  %6061 = vmatmul.mubr.f32.gmra.mrb[10].mxu1 %v7536_v58  ;;  %v4521_v25 = vsel %vm50_vm7, %v128_v20, 0 }
 0x117   :  { %5987 = vmatprep.mubr.f32.mxu0 %v7419_v42  ;;  %6071 = vmatprep.mubr.f32.mxu1 %v7423_v41  ;;  %v7704_v10 = vand.u32 4294901760, %v7678_v23  ;;  %v7714_v28 = vand.u32 4294901760, %v4521_v25  ;;  %v3969_v29 = vsub.f32 %v7665_v17, %v7695_v15 }
 0x119   :  { %v4605_v37 = vsub.f32 %v7678_v23, %v7704_v10  ;;  %v7734_v34 = vsub.f32 %v4521_v25, %v7714_v28  ;;  %v3970_v40 = vand.u32 4294901760, %v3969_v29 }
 0x11b   :  { %6490 = vmatpush3.bf16.xpose.msra.mxu0 %v6487_v54  ;;  %6538 = vmatpush3.bf16.xpose.msra.mxu1 %v6535_v55  ;;  %v4606_v47 = vand.u32 4294901760, %v4605_v37  ;;  %v7751_v54 = vand.u32 4294901760, %v7725_v31 }
 0x11c   :  { %6492 = vmatprep.subr.bf16.mxu0 %v7458_v51  ;;  %6540 = vmatprep.subr.bf16.mxu1 %v7462_v14 }
 0x11d   :  { %v3989_v56 = vsub.f32 %v7725_v31, %v7751_v54 }
 0x122   :  { %5988 = vmatmul.mubr.f32.vlgmr.msra.gmra.mrb[8].mxu0 %v7421_v24  ;;  %6072 = vmatmul.mubr.f32.vlgmr.msra.gmra.mrb[8].mxu1 %v7425_v44 }
 0x123   :  { %6494 = vmatpush3.bf16.xpose.msra.mxu0 %v7458_v51  ;;  %6542 = vmatpush3.bf16.xpose.msra.mxu1 %v7462_v14  ;;  %v7645_v51 = vand.u32 4294901760, %v3889_v1  ;;  %v7647_v14 = vand.u32 4294901760, %v4512_v5 }
 0x124   :  { %6496 = vmatprep.subr.bf16.mxu0 %v7514_v18  ;;  %6544 = vmatprep.subr.bf16.mxu1 %v7518_v19 }
 0x125   :  { %5990 = vmatprep.mubr.f32.mxu0 %v7484_v61  ;;  %6074 = vmatprep.mubr.f32.mxu1 %v7488_v53  ;;  %v7672_v21 = vsub.f32 %v3889_v1, %v7645_v51  ;;  %v7675_v22 = vsub.f32 %v4512_v5, %v7647_v14  ;;  %v7682_v48 = vpack.c.bf16 %v7645_v51, %v7643_v8 }
 0x126   :  { %5991 = vmatmul.mubr.f32.gmra.mrb[10].mxu0 %v7486_v52  ;;  %6075 = vmatmul.mubr.f32.gmra.mrb[10].mxu1 %v7490_v4 }
 0x127   :  { %6001 = vmatprep.mubr.f32.mxu0 %v7419_v42  ;;  %6085 = vmatprep.mubr.f32.mxu1 %v7423_v41  ;;  %v7686_v42 = vpack.c.bf16 %v7649_v9, %v7647_v14  ;;  %v3895_v41 = vsel %vm50_vm7, %v124_v13, 0  ;;  %v7698_v58 = vand.u32 4294901760, %v7672_v21  ;;  %v7701_v36 = vand.u32 4294901760, %v7675_v22 }
 0x128   :  { %v6563_v12 = vpack.c.bf16 %v7672_v21, %v7665_v17  ;;  %v6611_v13 = vpack.c.bf16 %v7678_v23, %v7675_v22 }
 0x129   :  { %v3979_v30 = vsub.f32 %v7672_v21, %v7698_v58  ;;  %v4595_v2 = vsub.f32 %v7675_v22, %v7701_v36 }
 0x12b   :  { %6498 = vmatpush3.bf16.xpose.msra.mxu0 %v7514_v18  ;;  %6546 = vmatpush3.bf16.xpose.msra.mxu1 %v7518_v19  ;;  %v7710_v18 = vand.u32 4294901760, %v3895_v41  ;;  %v7712_v19 = vand.u32 4294901760, %v4518_v43  ;;  %v3980_v45 = vand.u32 4294901760, %v3979_v30  ;;  %v4596_v46 = vand.u32 4294901760, %v4595_v2 }
 0x12c   :  { %6548 = vmatprep.subr.bf16.mxu0 %v7682_v48  ;;  %6596 = vmatprep.subr.bf16.mxu1 %v7686_v42 }
 0x12d   :  { %v7728_v32 = vsub.f32 %v3895_v41, %v7710_v18  ;;  %v7731_v33 = vsub.f32 %v4518_v43, %v7712_v19  ;;  %v7738_v38 = vpack.c.bf16 %v7710_v18, %v7708_v27  ;;  %v7742_v39 = vpack.c.bf16 %v7714_v28, %v7712_v19 }
 0x12f   :  { %v7754_v55 = vand.u32 4294901760, %v7728_v32  ;;  %v6567_v2 = vpack.c.bf16 %v7728_v32, %v7725_v31  ;;  %v6615_v37 = vpack.c.bf16 %v7734_v34, %v7731_v33 }
 0x131   :  { %v3999_v57 = vsub.f32 %v7728_v32, %v7754_v55 }
 0x132   :  { %6002 = vmatmul.mubr.f32.vlgmr.msra.gmra.mrb[8].mxu0 %v7421_v24  ;;  %6086 = vmatmul.mubr.f32.vlgmr.msra.gmra.mrb[8].mxu1 %v7425_v44  ;;  %v7757_v24 = vand.u32 4294901760, %v7731_v33  ;;  %v7760_v44 = vand.u32 4294901760, %v7734_v34 }
 0x133   :  { %6550 = vmatpush3.bf16.xpose.msra.mxu0 %v7682_v48  ;;  %6598 = vmatpush3.bf16.xpose.msra.mxu1 %v7686_v42 }
 0x134   :  { %6004 = vmatprep.mubr.f32.mxu0 %v7484_v61  ;;  %6088 = vmatprep.mubr.f32.mxu1 %v7488_v53  ;;  %v6555_v61 = vpack.c.bf16 %v3980_v45, %v3970_v40  ;;  %v6603_v53 = vpack.c.bf16 %v4606_v47, %v4596_v46  ;;  %v4615_v62 = vsub.f32 %v7731_v33, %v7757_v24 }
 0x135   :  { %6552 = vmatprep.subr.bf16.mxu0 %v7738_v38  ;;  %6600 = vmatprep.subr.bf16.mxu1 %v7742_v39  ;;  %v4625_v50 = vsub.f32 %v7734_v34, %v7760_v44 }
 0x136   :  { %6005 = vmatmul.mubr.f32.gmra.mrb[10].mxu0 %v7486_v52  ;;  %6089 = vmatmul.mubr.f32.gmra.mrb[10].mxu1 %v7490_v4  ;;  %v3990_v52 = vand.u32 4294901760, %v3989_v56  ;;  %v4000_v4 = vand.u32 4294901760, %v3999_v57  ;;  %v4616_v16 = vand.u32 4294901760, %v4615_v62 }
 0x137   :  { %6099 = vmatprep.mubr.f32.mxu0 %v3970_v40  ;;  %6183 = vmatprep.mubr.f32.mxu1 %v4596_v46  ;;  %v4626_v63 = vand.u32 4294901760, %v4625_v50 }
 0x138   :  { %v6559_v60 = vpack.c.bf16 %v4000_v4, %v3990_v52 }
 0x139   :  { %v6607_v3 = vpack.c.bf16 %v4626_v63, %v4616_v16 }
 0x13b   :  { %6554 = vmatpush3.bf16.xpose.msra.mxu0 %v7738_v38  ;;  %6602 = vmatpush3.bf16.xpose.msra.mxu1 %v7742_v39 }
 0x13c   :  { %6556 = vmatprep.subr.bf16.mxu0 %v6555_v61  ;;  %6604 = vmatprep.subr.bf16.mxu1 %v6603_v53 }
 0x142   :  { %6100 = vmatmul.mubr.f32.vlgmr.msra.gmra.mrb[12].mxu0 %v3980_v45  ;;  %6184 = vmatmul.mubr.f32.vlgmr.msra.gmra.mrb[12].mxu1 %v4606_v47 }
 0x143   :  { %6558 = vmatpush3.bf16.xpose.msra.mxu0 %v6555_v61  ;;  %6606 = vmatpush3.bf16.xpose.msra.mxu1 %v6603_v53 }
 0x144   :  { %6560 = vmatprep.subr.bf16.mxu0 %v6559_v60  ;;  %6608 = vmatprep.subr.bf16.mxu1 %v6607_v3 }
 0x145   :  { %v5667_v0 = vpop.f32.mrb[0].mxu0  ;;  %v5751_v1 = vpop.f32.mrb[0].mxu1  ;;  %6102 = vmatprep.mubr.f32.mxu0 %v3990_v52  ;;  %6186 = vmatprep.mubr.f32.mxu1 %v4616_v16 }
 0x146   :  { %v6643_v5 = vadd.f32 1e-08, %v5667_v0  ;;  %v6647_v6 = vadd.f32 1e-08, %v5751_v1  ;;  %v733_v26 = vpop.f32.mrb[1].mxu0  ;;  %v1359_v35 = vpop.f32.mrb[1].mxu1  ;;  %6103 = vmatmul.mubr.f32.gmra.mrb[14].mxu0 %v4000_v4  ;;  %6187 = vmatmul.mubr.f32.gmra.mrb[14].mxu1 %v4626_v63 }
 0x147   :  { %v6644_v7 = vadd.f32 1e-08, %v733_v26  ;;  %v6648_v11 = vadd.f32 1e-08, %v1359_v35  ;;  %6113 = vmatprep.mubr.f32.mxu0 %v7643_v8  ;;  %6197 = vmatprep.mubr.f32.mxu1 %v7647_v14 }
 0x148   :  { %5140 = vst.msk [vmem:[#allocation4 + $0x8] sm:$0xff] %vm50_vm7, %v6643_v5  ;;  %5144 = vst.msk [vmem:[#allocation4 + $0x28] sm:$0xff] %vm50_vm7, %v6647_v6 }
 0x149   :  { %5139 = vst.msk [vmem:[#allocation4] sm:$0xff] %vm50_vm7, %v6644_v7  ;;  %5143 = vst.msk [vmem:[#allocation4 + $0x20] sm:$0xff] %vm50_vm7, %v6648_v11  ;;  %v5670_v59 = vpop.f32.mrb[2].mxu0  ;;  %v5754_v20 = vpop.f32.mrb[2].mxu1 }
 0x14a   :  { %v6645_v49 = vadd.f32 1e-08, %v5670_v59  ;;  %v6649_v41 = vadd.f32 1e-08, %v5754_v20  ;;  %v745_v43 = vpop.f32.mrb[3].mxu0  ;;  %v1371_v25 = vpop.f32.mrb[3].mxu1 }
 0x14b   :  { %v6646_v29 = vadd.f32 1e-08, %v745_v43  ;;  %v6650_v30 = vadd.f32 1e-08, %v1371_v25  ;;  %6562 = vmatpush3.bf16.xpose.msra.mxu0 %v6559_v60  ;;  %6610 = vmatpush3.bf16.xpose.msra.mxu1 %v6607_v3 }
 0x14c   :  { %5142 = vst.msk [vmem:[#allocation4 + $0x18] sm:$0xff] %vm50_vm7, %v6645_v49  ;;  %5146 = vst.msk [vmem:[#allocation4 + $0x38] sm:$0xff] %vm50_vm7, %v6649_v41  ;;  %6564 = vmatprep.subr.bf16.mxu0 %v6563_v12  ;;  %6612 = vmatprep.subr.bf16.mxu1 %v6611_v13 }
 0x14d   :  { %5141 = vst.msk [vmem:[#allocation4 + $0x10] sm:$0xff] %vm50_vm7, %v6646_v29  ;;  %5145 = vst.msk [vmem:[#allocation4 + $0x30] sm:$0xff] %vm50_vm7, %v6650_v30 }
 0x152   :  { %6114 = vmatmul.mubr.f32.vlgmr.msra.gmra.mrb[12].mxu0 %v7645_v51  ;;  %6198 = vmatmul.mubr.f32.vlgmr.msra.gmra.mrb[12].mxu1 %v7649_v9 }
 0x153   :  { %6566 = vmatpush3.bf16.xpose.msra.mxu0 %v6563_v12  ;;  %6614 = vmatpush3.bf16.xpose.msra.mxu1 %v6611_v13 }
 0x154   :  { %6568 = vmatprep.subr.bf16.mxu0 %v6567_v2  ;;  %6616 = vmatprep.subr.bf16.mxu1 %v6615_v37 }
 0x155   :  { %6116 = vmatprep.mubr.f32.mxu0 %v7708_v27  ;;  %6200 = vmatprep.mubr.f32.mxu1 %v7712_v19 }
 0x156   :  { %6117 = vmatmul.mubr.f32.gmra.mrb[14].mxu0 %v7710_v18  ;;  %6201 = vmatmul.mubr.f32.gmra.mrb[14].mxu1 %v7714_v28 }
 0x157   :  { %6127 = vmatprep.mubr.f32.mxu0 %v7665_v17  ;;  %6211 = vmatprep.mubr.f32.mxu1 %v7675_v22  ;;  %v6579_v17 = vpack.c.bf16 %v7698_v58, %v7695_v15  ;;  %v6583_v22 = vpack.c.bf16 %v7754_v55, %v7751_v54 }
 0x15b   :  { %6570 = vmatpush3.bf16.xpose.msra.mxu0 %v6567_v2  ;;  %6618 = vmatpush3.bf16.xpose.msra.mxu1 %v6615_v37 }
 0x15c   :  { %6572 = vmatprep.subr.bf16.mxu0 %v7682_v48  ;;  %6620 = vmatprep.subr.bf16.mxu1 %v7686_v42 }
 0x162   :  { %6128 = vmatmul.mubr.f32.vlgmr.msra.gmra.mrb[12].mxu0 %v7672_v21  ;;  %6212 = vmatmul.mubr.f32.vlgmr.msra.gmra.mrb[12].mxu1 %v7678_v23  ;;  %v6627_v21 = vpack.c.bf16 %v7704_v10, %v7701_v36  ;;  %v6631_v23 = vpack.c.bf16 %v7760_v44, %v7757_v24 }
 0x163   :  { %6574 = vmatpush3.bf16.xpose.msra.mxu0 %v7682_v48  ;;  %6622 = vmatpush3.bf16.xpose.msra.mxu1 %v7686_v42 }
 0x164   :  { %6576 = vmatprep.subr.bf16.mxu0 %v7738_v38  ;;  %6624 = vmatprep.subr.bf16.mxu1 %v7742_v39 }
 0x165   :  { %6130 = vmatprep.mubr.f32.mxu0 %v7725_v31  ;;  %6214 = vmatprep.mubr.f32.mxu1 %v7731_v33 }
 0x166   :  { %6131 = vmatmul.mubr.f32.gmra.mrb[14].mxu0 %v7728_v32  ;;  %6215 = vmatmul.mubr.f32.gmra.mrb[14].mxu1 %v7734_v34 }
 0x167   :  { %6141 = vmatprep.mubr.f32.mxu0 %v7695_v15  ;;  %6225 = vmatprep.mubr.f32.mxu1 %v7701_v36 }
 0x16b   :  { %6578 = vmatpush3.bf16.xpose.msra.mxu0 %v7738_v38  ;;  %6626 = vmatpush3.bf16.xpose.msra.mxu1 %v7742_v39 }
 0x16c   :  { %6580 = vmatprep.subr.bf16.mxu0 %v6579_v17  ;;  %6628 = vmatprep.subr.bf16.mxu1 %v6627_v21 }
 0x172   :  { %6142 = vmatmul.mubr.f32.vlgmr.msra.gmra.mrb[12].mxu0 %v7698_v58  ;;  %6226 = vmatmul.mubr.f32.vlgmr.msra.gmra.mrb[12].mxu1 %v7704_v10 }
 0x173   :  { %6582 = vmatpush3.bf16.xpose.msra.mxu0 %v6579_v17  ;;  %6630 = vmatpush3.bf16.xpose.msra.mxu1 %v6627_v21 }
 0x174   :  { %6584 = vmatprep.subr.bf16.mxu0 %v6583_v22  ;;  %6632 = vmatprep.subr.bf16.mxu1 %v6631_v23 }
 0x175   :  { %6144 = vmatprep.mubr.f32.mxu0 %v7751_v54  ;;  %6228 = vmatprep.mubr.f32.mxu1 %v7757_v24 }
 0x176   :  { %6145 = vmatmul.mubr.f32.gmra.mrb[14].mxu0 %v7754_v55  ;;  %6229 = vmatmul.mubr.f32.gmra.mrb[14].mxu1 %v7760_v44 }
 0x177   :  { %6155 = vmatprep.mubr.f32.mxu0 %v7643_v8  ;;  %6239 = vmatprep.mubr.f32.mxu1 %v7647_v14 }
 0x17b   :  { %6586 = vmatpush3.bf16.xpose.msra.mxu0 %v6583_v22  ;;  %6634 = vmatpush3.bf16.xpose.msra.mxu1 %v6631_v23 }
 0x17c   :  { %6588 = vmatprep.subr.bf16.mxu0 %v7682_v48  ;;  %6636 = vmatprep.subr.bf16.mxu1 %v7686_v42 }
 0x182   :  { %6156 = vmatmul.mubr.f32.vlgmr.msra.gmra.mrb[12].mxu0 %v7645_v51  ;;  %6240 = vmatmul.mubr.f32.vlgmr.msra.gmra.mrb[12].mxu1 %v7649_v9 }
 0x183   :  { %6590 = vmatpush3.bf16.xpose.msra.mxu0 %v7682_v48  ;;  %6638 = vmatpush3.bf16.xpose.msra.mxu1 %v7686_v42 }
 0x184   :  { %6592 = vmatprep.subr.bf16.mxu0 %v7738_v38  ;;  %6640 = vmatprep.subr.bf16.mxu1 %v7742_v39 }
 0x185   :  { %6158 = vmatprep.mubr.f32.mxu0 %v7708_v27  ;;  %6242 = vmatprep.mubr.f32.mxu1 %v7712_v19 }
 0x186   :  { %6159 = vmatmul.mubr.f32.gmra.mrb[14].mxu0 %v7710_v18  ;;  %6243 = vmatmul.mubr.f32.gmra.mrb[14].mxu1 %v7714_v28 }
 0x187   :  { %6169 = vmatprep.mubr.f32.mxu0 %v7643_v8  ;;  %6253 = vmatprep.mubr.f32.mxu1 %v7647_v14 }
 0x18b   :  { %6594 = vmatpush3.bf16.xpose.msra.mxu0 %v7738_v38  ;;  %6642 = vmatpush3.bf16.xpose.msra.mxu1 %v7742_v39 }
 0x192   :  { %6170 = vmatmul.mubr.f32.vlgmr.msra.gmra.mrb[12].mxu0 %v7645_v51  ;;  %6254 = vmatmul.mubr.f32.vlgmr.msra.gmra.mrb[12].mxu1 %v7649_v9 }
 0x193   :  { %6172 = vmatprep.mubr.f32.mxu0 %v7708_v27  ;;  %6256 = vmatprep.mubr.f32.mxu1 %v7712_v19 }
 0x196   :  { %6173 = vmatmul.mubr.f32.gmra.mrb[14].mxu0 %v7710_v18  ;;  %6257 = vmatmul.mubr.f32.gmra.mrb[14].mxu1 %v7714_v28 }
 0x1a5   :  { %v5835_v48 = vpop.f32.mrb[4].mxu0  ;;  %v5919_v8 = vpop.f32.mrb[4].mxu1 }
 0x1a6   :  { %v6651_v42 = vadd.f32 1e-08, %v5835_v48  ;;  %v6655_v14 = vadd.f32 1e-08, %v5919_v8  ;;  %v1985_v15 = vpop.f32.mrb[5].mxu0  ;;  %v2611_v58 = vpop.f32.mrb[5].mxu1 }
 0x1a7   :  { %v6652_v36 = vadd.f32 1e-08, %v1985_v15  ;;  %v6656_v10 = vadd.f32 1e-08, %v2611_v58 }
 0x1a8   :  { %5148 = vst.msk [vmem:[#allocation4 + $0x48] sm:$0xff] %vm50_vm7, %v6651_v42  ;;  %5152 = vst.msk [vmem:[#allocation4 + $0x68] sm:$0xff] %vm50_vm7, %v6655_v14 }
 0x1a9   :  { %5147 = vst.msk [vmem:[#allocation4 + $0x40] sm:$0xff] %vm50_vm7, %v6652_v36  ;;  %5151 = vst.msk [vmem:[#allocation4 + $0x60] sm:$0xff] %vm50_vm7, %v6656_v10  ;;  %v5838_v51 = vpop.f32.mrb[6].mxu0  ;;  %v5922_v9 = vpop.f32.mrb[6].mxu1 }
 0x1aa   :  { %v6653_v27 = vadd.f32 1e-08, %v5838_v51  ;;  %v6657_v18 = vadd.f32 1e-08, %v5922_v9  ;;  %v1997_v19 = vpop.f32.mrb[7].mxu0  ;;  %v2623_v28 = vpop.f32.mrb[7].mxu1 }
 0x1ab   :  { %v6654_v31 = vadd.f32 1e-08, %v1997_v19  ;;  %v6658_v32 = vadd.f32 1e-08, %v2623_v28 }
 0x1ac   :  { %5150 = vst.msk [vmem:[#allocation4 + $0x58] sm:$0xff] %vm50_vm7, %v6653_v27  ;;  %5154 = vst.msk [vmem:[#allocation4 + $0x78] sm:$0xff] %vm50_vm7, %v6657_v18 }
 0x1ad   :  { %5149 = vst.msk [vmem:[#allocation4 + $0x50] sm:$0xff] %vm50_vm7, %v6654_v31  ;;  %5153 = vst.msk [vmem:[#allocation4 + $0x70] sm:$0xff] %vm50_vm7, %v6658_v32 }
 0x205   :  { %v6003_v33 = vpop.f32.mrb[8].mxu0  ;;  %v6087_v34 = vpop.f32.mrb[8].mxu1 }
 0x206   :  { %v6659_v38 = vadd.f32 1e-08, %v6003_v33  ;;  %v6663_v39 = vadd.f32 1e-08, %v6087_v34  ;;  %v3237_v40 = vpop.f32.mrb[9].mxu0  ;;  %v3863_v45 = vpop.f32.mrb[9].mxu1 }
 0x207   :  { %v6660_v46 = vadd.f32 1e-08, %v3237_v40  ;;  %v6664_v47 = vadd.f32 1e-08, %v3863_v45 }
 0x208   :  { %5156 = vst.msk [vmem:[#allocation4 + $0x88] sm:$0xff] %vm50_vm7, %v6659_v38  ;;  %5160 = vst.msk [vmem:[#allocation4 + $0xa8] sm:$0xff] %vm50_vm7, %v6663_v39 }
 0x209   :  { %5155 = vst.msk [vmem:[#allocation4 + $0x80] sm:$0xff] %vm50_vm7, %v6660_v46  ;;  %5159 = vst.msk [vmem:[#allocation4 + $0xa0] sm:$0xff] %vm50_vm7, %v6664_v47  ;;  %v6006_v54 = vpop.f32.mrb[10].mxu0  ;;  %v6090_v55 = vpop.f32.mrb[10].mxu1 }
 0x20a   :  { %v6661_v24 = vadd.f32 1e-08, %v6006_v54  ;;  %v6665_v44 = vadd.f32 1e-08, %v6090_v55  ;;  %v3249_v61 = vpop.f32.mrb[11].mxu0  ;;  %v3875_v53 = vpop.f32.mrb[11].mxu1 }
 0x20b   :  { %v6662_v56 = vadd.f32 1e-08, %v3249_v61  ;;  %v6666_v57 = vadd.f32 1e-08, %v3875_v53 }
 0x20c   :  { %5158 = vst.msk [vmem:[#allocation4 + $0x98] sm:$0xff] %vm50_vm7, %v6661_v24  ;;  %5162 = vst.msk [vmem:[#allocation4 + $0xb8] sm:$0xff] %vm50_vm7, %v6665_v44 }
 0x20d   :  { %5157 = vst.msk [vmem:[#allocation4 + $0x90] sm:$0xff] %vm50_vm7, %v6662_v56  ;;  %5161 = vst.msk [vmem:[#allocation4 + $0xb0] sm:$0xff] %vm50_vm7, %v6666_v57 }
 0x265   :  { %v6171_v62 = vpop.f32.mrb[12].mxu0  ;;  %v6255_v50 = vpop.f32.mrb[12].mxu1 }
 0x266   :  { %v6667_v52 = vadd.f32 1e-08, %v6171_v62  ;;  %v6671_v4 = vadd.f32 1e-08, %v6255_v50  ;;  %v4489_v16 = vpop.f32.mrb[13].mxu0  ;;  %v5115_v63 = vpop.f32.mrb[13].mxu1 }
 0x267   :  { %v6668_v60 = vadd.f32 1e-08, %v4489_v16  ;;  %v6672_v3 = vadd.f32 1e-08, %v5115_v63 }
 0x268   :  { %5164 = vst.msk [vmem:[#allocation4 + $0xc8] sm:$0xff] %vm50_vm7, %v6667_v52  ;;  %5168 = vst.msk [vmem:[#allocation4 + $0xe8] sm:$0xff] %vm50_vm7, %v6671_v4 }
 0x269   :  { %5163 = vst.msk [vmem:[#allocation4 + $0xc0] sm:$0xff] %vm50_vm7, %v6668_v60  ;;  %5167 = vst.msk [vmem:[#allocation4 + $0xe0] sm:$0xff] %vm50_vm7, %v6672_v3  ;;  %v6174_v0 = vpop.f32.mrb[14].mxu0  ;;  %v6258_v1 = vpop.f32.mrb[14].mxu1 }
 0x26a   :  { %v6669_v5 = vadd.f32 1e-08, %v6174_v0  ;;  %v6673_v6 = vadd.f32 1e-08, %v6258_v1  ;;  %v4501_v26 = vpop.f32.mrb[15].mxu0  ;;  %v5127_v35 = vpop.f32.mrb[15].mxu1 }
 0x26b   :  { %v6670_v7 = vadd.f32 1e-08, %v4501_v26  ;;  %v6674_v11 = vadd.f32 1e-08, %v5127_v35 }
 0x26c   :  { %5166 = vst.msk [vmem:[#allocation4 + $0xd8] sm:$0xff] %vm50_vm7, %v6669_v5  ;;  %5170 = vst.msk [vmem:[#allocation4 + $0xf8] sm:$0xff] %vm50_vm7, %v6673_v6 }
 0x26d   :  { %5165 = vst.msk [vmem:[#allocation4 + $0xd0] sm:$0xff] %vm50_vm7, %v6670_v7  ;;  %5169 = vst.msk [vmem:[#allocation4 + $0xf0] sm:$0xff] %vm50_vm7, %v6674_v11 }
 0x26e   :  { %5175 = vsyncadd [#allocation3], 96  ;;  %s6889_s0 = smov [#allocation2]  }
 0x26f   :  { %s5176_s5 = sshll.u32 %s6889_s0, 4  ;;  %s5177_s5 = int_to_ptr.vmem [resolvable:$true] %s5176_s5 }
 0x270   :  { %s6841_s6 = scalar_lea.vmem %s5177_s5, 32  ;;  %s6845_s7 = scalar_lea.vmem %s5177_s5, 128 }
 0x271   :  { %p6842_p0 = scmp.ne.s32.totalorder %s5177_s5, %s6841_s6  ;;  %p6846_p1 = scmp.lt.s32.totalorder %s5177_s5, %s5177_s5 }
 0x272   :  { %p6847_p2 = scmp.lt.s32.totalorder %s6845_s7, %s6841_s6 }
 0x274   :  { %p6848_p3 = por %p6847_p2, %p6846_p1 }
 0x276   :  { %p6849_p4 = pnand %p6848_p3, %p6842_p0 }
 0x278   :  { %6852 = shalt.err (!%p6849_p4)
}
 0x279   :  { %s6853_s10 = scalar_lea.hbm %s7905_s1, 32 }
 0x27a   :  { %p6854_p5 = scmp.ne.s32.totalorder %s7905_s1, %s6853_s10  ;;  %p6857_p6 = scmp.lt.u32.totalorder %s6853_s10, %s7905_s1 }
 0x27c   :  { %p6859_p7 = pnand %p6857_p6, %p6854_p5 }
 0x27e   :  { %6862 = shalt.err (!%p6859_p7)
}
 0x27f   :  { %s6890_s15 = smov 32   ;;  %s6891_s16 = smov 2  }
 0x280   :  { %5182 = dma.vmem_to_hbm [thread:$0]  %s5177_s5, 32, %s7905_s1, [#allocation3], %s6890_s15, %s6890_s15, %s6891_s16  }
 0x281   :  { %5187 = vsyncadd [#allocation5], 3072  ;;  %s6892_s19 = smov [#allocation4]  }
 0x282   :  { %s5188_s20 = sshll.u32 %s6892_s19, 4  ;;  %s5189_s20 = int_to_ptr.vmem [resolvable:$true] %s5188_s20 }
 0x283   :  { %s6863_s21 = scalar_lea.vmem %s5189_s20, 1024  ;;  %s6867_s22 = scalar_lea.vmem %s5189_s20, 4096 }
 0x284   :  { %p6864_p8 = scmp.ne.s32.totalorder %s5189_s20, %s6863_s21  ;;  %p6868_p9 = scmp.lt.s32.totalorder %s5189_s20, %s5189_s20 }
 0x285   :  { %p6869_p10 = scmp.lt.s32.totalorder %s6867_s22, %s6863_s21 }
 0x287   :  { %p6870_p11 = por %p6869_p10, %p6868_p9 }
 0x289   :  { %p6871_p12 = pnand %p6870_p11, %p6864_p8 }
 0x28b   :  { %6874 = shalt.err (!%p6871_p12)
}
 0x28c   :  { %s6875_s25 = scalar_lea.hbm %s7906_s2, 1024 }
 0x28d   :  { %p6876_p13 = scmp.ne.s32.totalorder %s7906_s2, %s6875_s25  ;;  %p6879_p0 = scmp.lt.u32.totalorder %s6875_s25, %s7906_s2 }
 0x28f   :  { %p6881_p1 = pnand %p6879_p0, %p6876_p13 }
 0x291   :  { %6884 = shalt.err (!%p6881_p1)
}
 0x292   :  { %s6893_s29 = smov 128   ;;  %s6894_s30 = smov 8  }
 0x293   :  { %5194 = dma.vmem_to_hbm [thread:$0]  %s5189_s20, 1024, %s7906_s2, [#allocation5], %s6893_s29, %s6893_s29, %s6894_s30  }
 0x294   :  { %6885 = dma.done.wait [#allocation3], 128  }
 0x295   :  { %6886 = vsyncadd [#allocation3], 4294967168 }
 0x296   :  { %6887 = dma.done.wait [#allocation5], 4096  }
 0x297   :  { %6888 = vsyncadd [#allocation5], 4294963200 }
 0x298   :  { %5201 = vsyncpa [#allocation3], 1 }
 0x299   :  { %5202 = vsyncpa [#allocation5], 1 }

</bundles_post_ra>
